<compile_context>
chip_gen: v7x
topology: tpu7x:2x2x1
jax: 0.10.0
libtpu: 0.0.40
codegen_flags: <defaults>
</compile_context>

<pallas_src>
import functools

import jax
import jax.numpy as jnp
from jax.experimental import pallas as pl
from jax.experimental.pallas import tpu as pltpu


def _cam_head_kernel(feat_ref, w_ref, b_ref, cam_ref, logit_ref, *, use_attn, inv_S):
    """One batch-tile of BT images per grid step.

    feat_ref : (BT, C, S)   backbone features (NCHW with H*W fused), native dtype
    w_ref    : (BT, Kp, C)  stacked classifier weights (resident; broadcast over BT)
    b_ref    : (Kp, 1)      stacked classifier biases (f32, resident)
    cam_ref  : (BT, Kp, S)  class activation maps
    logit_ref: (BT, Kp)     pooled logits for the BT images of this tile
    """
    # 1x1 conv over the tile == batched MXU matmul, f32 accumulate.
    cam = jnp.einsum(
        "bkc,bcs->bks", w_ref[...], feat_ref[...],
        preferred_element_type=jnp.float32,
    )                                                   # (BT, Kp, S) f32
    cam = cam + b_ref[...][None, :, :]                   # bias broadcast
    cam_ref[...] = cam.astype(cam_ref.dtype)

    if use_attn:
        # spatial softmax attention pooling, per image / per class:
        #   logits = sum(cam * softmax(cam)) over the spatial axis.
        m = jnp.max(cam, axis=-1, keepdims=True)         # per-image, per-class max
        e = jnp.exp(cam - m)                             # (BT, Kp, S)
        e_sum = jnp.sum(e, axis=-1)                      # (BT, Kp)
        ce_sum = jnp.sum(cam * e, axis=-1)               # (BT, Kp)
        logits = ce_sum * pl.reciprocal(e_sum, approx=True)
    else:
        logits = jnp.sum(cam, axis=-1) * inv_S           # spatial mean
    logit_ref[...] = logits.astype(logit_ref.dtype)


def _vmem_budget():
    """(vmem_limit_bytes, per-step tile budget) sized against the running chip."""
    try:
        cap = int(pltpu.get_tpu_info().vmem_capacity_bytes)
    except Exception:
        cap = 64 << 20  # conservative: v7x per-TensorCore physical VMEM
    limit = max(32 << 20, min(cap - (12 << 20), 100 << 20))
    return limit, limit // 2


def _pick_batch_tile(B, C, S, Kp, feat_itemsize, cam_itemsize, budget):
    """Largest batch tile whose blocks (double-buffered) + intermediates fit
    the VMEM budget, preferring >= 2 grid steps (pipelining / megacore)."""
    per_img = (
        2 * C * S * feat_itemsize      # double-buffered feature block
        + 2 * Kp * S * cam_itemsize    # double-buffered cam output block
        + 4 * Kp * S * 4               # f32 in-kernel intermediates (cam, e, cam*e, ...)
        + 2 * Kp * C * 4               # broadcast classifier weights (resident)
        + 2 * Kp * 4                   # pooled logits
    )
    fits = [bt for bt in range(1, B + 1) if B % bt == 0 and bt * per_img <= budget]
    if not fits:
        return 1
    multi = [bt for bt in fits if B // bt >= 2]
    return max(multi) if multi else max(fits)


def cam_head_stacked(features_nchw, weight, bias, *, use_attn):
    """CAM maps + pooled logits for ALL tasks' stacked classifiers in one call.

    features_nchw: (B, C, H, W) backbone output
    weight       : (K, C)       all tasks' Linear weights, concatenated
    bias         : (K,)         all tasks' Linear biases, concatenated
    returns      : cam (B, K, H, W), logits (B, K)
    """
    B, C, H, W = features_nchw.shape
    K = weight.shape[0]
    S = H * W

    # (B, C, S): a free reshape of NCHW — no HBM transpose.
    feat = features_nchw.reshape(B, C, S)

    # pad class count to a full sublane group
    Kp = ((K + 7) // 8) * 8
    if Kp != K:
        weight = jnp.pad(weight, ((0, Kp - K), (0, 0)))
        bias = jnp.pad(bias, ((0, Kp - K),))
    bias2d = bias.reshape(Kp, 1).astype(jnp.float32)

    vmem_limit, tile_budget = _vmem_budget()
    BT = _pick_batch_tile(
        B, C, S, Kp,
        feat_itemsize=feat.dtype.itemsize,
        cam_itemsize=feat.dtype.itemsize,
        budget=tile_budget,
    )
    num_tiles = B // BT

    # Classifier weights broadcast to the batch tile once on the host side and
    # DMA'd once (constant index_map -> resident across grid steps).
    w_bcast = jnp.broadcast_to(weight.astype(feat.dtype)[None], (BT, Kp, C))

    kernel = functools.partial(_cam_head_kernel, use_attn=use_attn, inv_S=1.0 / float(S))
    cam, logits = pl.pallas_call(
        kernel,
        out_shape=(
            jax.ShapeDtypeStruct((B, Kp, S), features_nchw.dtype),
            jax.ShapeDtypeStruct((num_tiles, BT, Kp), jnp.float32),
        ),
        grid_spec=pltpu.PrefetchScalarGridSpec(
            num_scalar_prefetch=0,
            grid=(num_tiles,),
            in_specs=[
                pl.BlockSpec((BT, C, S), lambda t: (t, 0, 0)),
                pl.BlockSpec((BT, Kp, C), lambda t: (0, 0, 0)),   # resident
                pl.BlockSpec((Kp, 1), lambda t: (0, 0)),          # resident
            ],
            out_specs=(
                pl.BlockSpec((BT, Kp, S), lambda t: (t, 0, 0)),
                pl.BlockSpec((None, BT, Kp), lambda t: (t, 0, 0)),
            ),
        ),
        compiler_params=pltpu.CompilerParams(
            dimension_semantics=("parallel",),
            vmem_limit_bytes=vmem_limit,
        ),
    )(feat, w_bcast, bias2d)

    cam = cam.reshape(B, Kp, H, W)[:, :K]          # free reshape, no transpose
    logits = logits.reshape(B, Kp)[:, :K]          # (num_tiles*BT, Kp) row-major == (B, Kp)
    return cam, logits


class NetPallas:
    """Mirrors Net.forward for the head: per-task CAM conv + pooling.

    `features` plays the role of `self.net(input)` (backbone output, NCHW).
    All tasks share one fused Pallas call; results are split per task.
    """

    def __init__(self, config, in_features, key):
        self.config = config
        self.gen_cam_map = config["gen_cam_map"]
        self.params = {}
        for i, (t_name, n_cls) in enumerate(config["cls_tasks"].items()):
            kw, kb = jax.random.split(jax.random.fold_in(key, i))
            # deterministic synthetic init (Linear(in_features, n_cls) shapes)
            w = jax.random.normal(kw, (n_cls, in_features), jnp.float32) * 0.05
            b = jax.random.normal(kb, (n_cls,), jnp.float32) * 0.05
            self.params[t_name] = (w, b)

    def forward(self, features):
        use_attn = len(self.config["attn_tasks"]) != 0
        task_names = list(self.config["cls_tasks"].keys())

        cls_logits, cls_maps = [], []
        if self.gen_cam_map:
            w_all = jnp.concatenate([self.params[t][0] for t in task_names], axis=0)
            b_all = jnp.concatenate([self.params[t][1] for t in task_names], axis=0)
            cam_all, logits_all = cam_head_stacked(features, w_all, b_all,
                                                   use_attn=use_attn)
            off = 0
            for t in task_names:
                k = int(self.config["cls_tasks"][t])
                cls_maps.append(cam_all[:, off:off + k])
                cls_logits.append(logits_all[:, off:off + k])
                off += k
        else:
            # TODO(synk): get_cam_faster returns None when gen_cam_map is off.
            cls_maps = [None] * len(task_names)

        attn_logits = []
        if use_attn:
            for a_name in self.config["attn_tasks"]:
                c_name = self.config["attn_tasks"][a_name]["attn_of"]
                attn_logits.append(cls_maps[task_names.index(c_name)])
        return cls_logits, attn_logits, cls_maps


def _reference(features, params, config):
    """Pure-jnp reference of the same head (for correctness check)."""
    use_attn = len(config["attn_tasks"]) != 0
    cls_logits, cls_maps = [], []
    for t_name in config["cls_tasks"]:
        w, b = params[t_name]
        cam = jnp.einsum("bchw,kc->bkhw", features, w) + b[None, :, None, None]
        cls_maps.append(cam)
        B, K = cam.shape[0], cam.shape[1]
        if use_attn:
            a = jax.nn.softmax(cam.reshape(B, K, -1), axis=2).reshape(cam.shape)
            cls_logits.append((cam * a).sum(axis=(2, 3)))
        else:
            cls_logits.append(cam.mean(axis=(2, 3)))
    return cls_logits, cls_maps


if __name__ == "__main__":
    config = {
        "network": "resnet18",
        "pretrained": False,
        "gen_cam_map": True,
        "cls_tasks": {"task_a": 5, "task_b": 3},
        "attn_tasks": {"attn_a": {"attn_of": "task_a"}},
    }

    B, C, H, W = 2, 32, 8, 8  # C plays the role of resnet `in_features`
    key = jax.random.PRNGKey(0)
    k_feat, k_params = jax.random.split(key)
    features = jax.random.normal(k_feat, (B, C, H, W), jnp.float32)

    net = NetPallas(config, in_features=C, key=k_params)
    cls_logits, attn_logits, cls_maps = net.forward(features)
    jax.block_until_ready((cls_logits, attn_logits, cls_maps))

    # sanity check against a pure-jnp reference
    ref_logits, ref_maps = _reference(features, net.params, config)
    for got, ref in zip(cls_maps, ref_maps):
        assert jnp.allclose(got, ref, atol=1e-4, rtol=1e-4), "cam mismatch"
    for got, ref in zip(cls_logits, ref_logits):
        # approx reciprocal in the softmax denominator -> slightly looser tol
        assert jnp.allclose(got, ref, atol=1e-3, rtol=2e-3), "logits mismatch"
    assert len(attn_logits) == 1 and attn_logits[0].shape == (B, 5, H, W)

    print("KERNEL_OK")
</pallas_src>

<mosaic_0001>
module attributes {stable_mosaic.version = 11 : i64} {
  func.func @_cam_head_kernel(%arg0: i32, %arg1: memref<1x32x64xf32, #tpu.memory_space<vmem>>, %arg2: memref<1x8x32xf32, #tpu.memory_space<vmem>>, %arg3: memref<8x1xf32, #tpu.memory_space<vmem>>, %arg4: memref<1x8x64xf32, #tpu.memory_space<vmem>>, %arg5: memref<1x1x8xf32, #tpu.memory_space<vmem>>) attributes {dimension_semantics = [#tpu.dimension_semantics<parallel>], iteration_bounds = array<i64: 2>, scalar_prefetch = 0 : i64, scratch_operands = 0 : i64, tpu.core_type = #tpu.core_type<tc>, window_params = [{transform_indices = @transform_0, window_bounds = array<i64: 1, 32, 64>}, {pipeline_mode = #tpu.pipeline_mode<synchronous>, transform_indices = @transform_1, window_bounds = array<i64: 1, 8, 32>}, {pipeline_mode = #tpu.pipeline_mode<synchronous>, transform_indices = @transform_2, window_bounds = array<i64: 8, 1>}, {transform_indices = @transform_3, window_bounds = array<i64: 1, 8, 64>}, {transform_indices = @transform_4, window_bounds = array<i64: 1, 1, 8>}]} {
    %c0 = arith.constant 0 : index
    %c0_0 = arith.constant 0 : index
    %c0_1 = arith.constant 0 : index
    %0 = vector.load %arg2[%c0, %c0_0, %c0_1] : memref<1x8x32xf32, #tpu.memory_space<vmem>>, vector<1x8x32xf32>
    %c0_2 = arith.constant 0 : index
    %c0_3 = arith.constant 0 : index
    %c0_4 = arith.constant 0 : index
    %1 = vector.load %arg1[%c0_2, %c0_3, %c0_4] : memref<1x32x64xf32, #tpu.memory_space<vmem>>, vector<1x32x64xf32>
    "tpu.trace_start"() <{level = 10 : i32, message = "bkc,bcs->bks"}> : () -> ()
    %cst = arith.constant dense<0.000000e+00> : vector<1x8x64xf32>
    %2 = tpu.matmul %0, %1, %cst {dimension_numbers = #tpu.dot_dimension_numbers<[2], [1], [1], [2], [0, 0, 0, 1, 1, 2], [0], [0]>} : vector<1x8x32xf32>, vector<1x32x64xf32>, vector<1x8x64xf32> -> vector<1x8x64xf32>
    "tpu.trace_stop"() : () -> ()
    %c0_5 = arith.constant 0 : index
    %c0_6 = arith.constant 0 : index
    %3 = vector.load %arg3[%c0_5, %c0_6] : memref<8x1xf32, #tpu.memory_space<vmem>>, vector<8x1xf32>
    %4 = vector.shape_cast %3 : vector<8x1xf32> to vector<1x8x1xf32>
    %5 = vector.broadcast %4 : vector<1x8x1xf32> to vector<1x8x64xf32>
    %6 = arith.addf %2, %5 : vector<1x8x64xf32>
    %c0_7 = arith.constant 0 : index
    %c0_8 = arith.constant 0 : index
    %c0_9 = arith.constant 0 : index
    %7 = vector.load %arg4[%c0_7, %c0_8, %c0_9] : memref<1x8x64xf32, #tpu.memory_space<vmem>>, vector<1x8x64xf32>
    tpu.vector_store %arg4[%c0_7, %c0_8, %c0_9], %6 {strides = array<i32>} : memref<1x8x64xf32, #tpu.memory_space<vmem>>, vector<1x8x64xf32>,
    %cst_10 = arith.constant dense<0xFF800000> : vector<1x8xf32>
    %8 = vector.multi_reduction <maximumf>, %6, %cst_10 [2] : vector<1x8x64xf32> to vector<1x8xf32>
    %9 = vector.shape_cast %8 : vector<1x8xf32> to vector<1x8x1xf32>
    %10 = vector.broadcast %9 : vector<1x8x1xf32> to vector<1x8x64xf32>
    %11 = arith.subf %6, %10 : vector<1x8x64xf32>
    %12 = math.exp %11 : vector<1x8x64xf32>
    %cst_11 = arith.constant dense<0.000000e+00> : vector<1x8xf32>
    %13 = vector.multi_reduction <add>, %12, %cst_11 [2] : vector<1x8x64xf32> to vector<1x8xf32>
    %14 = arith.mulf %6, %12 : vector<1x8x64xf32>
    %cst_12 = arith.constant dense<0.000000e+00> : vector<1x8xf32>
    %15 = vector.multi_reduction <add>, %14, %cst_12 [2] : vector<1x8x64xf32> to vector<1x8xf32>
    %16 = tpu.reciprocal %13 {approx = true} : vector<1x8xf32> -> vector<1x8xf32>
    %17 = arith.mulf %15, %16 : vector<1x8xf32>
    %c0_13 = arith.constant 0 : index
    %c0_14 = arith.constant 0 : index
    %c0_15 = arith.constant 0 : index
    %18 = vector.load %arg5[%c0_13, %c0_14, %c0_15] : memref<1x1x8xf32, #tpu.memory_space<vmem>>, vector<1x1x8xf32>
    %19 = vector.shape_cast %18 : vector<1x1x8xf32> to vector<1x8xf32>
    %20 = vector.shape_cast %17 : vector<1x8xf32> to vector<1x1x8xf32>
    tpu.vector_store %arg5[%c0_13, %c0_14, %c0_15], %20 {strides = array<i32>} : memref<1x1x8xf32, #tpu.memory_space<vmem>>, vector<1x1x8xf32>,
    return
  }
  func.func @transform_0(%arg0: i32) -> (i32, i32, i32) {
    %c0_i32 = arith.constant 0 : i32
    %c0_i32_0 = arith.constant 0 : i32
    %c0_i32_1 = arith.constant 0 : i32
    return %arg0, %c0_i32, %c0_i32_0 : i32, i32, i32
  }
  func.func @transform_1(%arg0: i32) -> (i32, i32, i32) {
    %c0_i32 = arith.constant 0 : i32
    %c0_i32_0 = arith.constant 0 : i32
    %c0_i32_1 = arith.constant 0 : i32
    %c0_i32_2 = arith.constant 0 : i32
    return %c0_i32, %c0_i32_0, %c0_i32_1 : i32, i32, i32
  }
  func.func @transform_2(%arg0: i32) -> (i32, i32) {
    %c0_i32 = arith.constant 0 : i32
    %c0_i32_0 = arith.constant 0 : i32
    %c0_i32_1 = arith.constant 0 : i32
    return %c0_i32, %c0_i32_0 : i32, i32
  }
  func.func @transform_3(%arg0: i32) -> (i32, i32, i32) {
    %c0_i32 = arith.constant 0 : i32
    %c0_i32_0 = arith.constant 0 : i32
    %c0_i32_1 = arith.constant 0 : i32
    return %arg0, %c0_i32, %c0_i32_0 : i32, i32, i32
  }
  func.func @transform_4(%arg0: i32) -> (i32, i32, i32) {
    %c0_i32 = arith.constant 0 : i32
    %c0_i32_0 = arith.constant 0 : i32
    %c0_i32_1 = arith.constant 0 : i32
    return %arg0, %c0_i32, %c0_i32_0 : i32, i32, i32
  }
}

</mosaic_0001>

<bundles_post_ra>
// kernel: tpu_custom_call.1
= control target key start
LH: loop header
LB: loop body
LE: loop exit
PB: predicated region body
PF: predicated region fallthrough
CT: control target
= control target key end

     0   :  { %10 = vsyncpa [#allocation3], 0  ;;  %s923_s0 = inlined_call_operand.hbm [shape: f32[2,32,64], index: 0, kind: input, shape index: {}]   ;;  %s924_s1 = inlined_call_operand.vmem [shape: f32[1,8,32], index: 1, kind: input, shape index: {}]   ;;  %s925_s2 = inlined_call_operand.vmem [shape: f32[8,1], index: 2, kind: input, shape index: {}]   ;;  %s926_s3 = inlined_call_operand.hbm [shape: f32[2,8,64], index: 3, kind: output, shape index: {0}]   ;;  %s927_s4 = inlined_call_operand.hbm [shape: f32[2,1,8], index: 4, kind: output, shape index: {1}]  }
   0x1   :  { %12 = vsyncpa [#allocation3 + $0x1], 0 }
   0x2   :  { %13 = vsyncpa [#allocation4], 0 }
   0x3   :  { %15 = vsyncpa [#allocation4 + $0x1], 0 }
   0x4   :  { %16 = vsyncpa [#allocation7], 0 }
   0x5   :  { %18 = vsyncpa [#allocation7 + $0x1], 0  ;;  %s731_s15 = smov 0   ;;  %s733_s16 = smov 0  }
   0x6   :  { %s735_s17 = smov 0   ;;  %s737_s18 = smov 0  }
   0x7 LB: > { %s752_s19 = sadd.s32 4294967295, %s695_s18   ;;  %s467_s20 = sadd.s32 4294967294, %s695_s18   ;;  %s695_s18 = sphi %s737_s18, %s940_s18   ;;  %s691_s17 = sphi %s735_s17, %s939_s17   ;;  %s687_s16 = sphi %s733_s16, %s938_s16   ;;  %s683_s15 = sphi %s731_s15, %s937_s15  }
   0x8   : > { %s756_s21 = sadd.s32 1, %s695_s18   ;;  %s31_s22 = sadd.s32 1, %s691_s17 }
   0x9   : > { %s28_s23 = ssub.s32 %s695_s18, %s756_s21  ;;  %p38_p0 = scmp.ne.s32.totalorder %s691_s17, %s687_s16 }
   0xa   : > { %p29_p1 = scmp.eq.s32.totalorder %s28_s23, 0  ;;  %p39_p2 = scmp.eq.s32.totalorder %s695_s18, 0 }
   0xb   : > { %p44_p3 = scmp.ne.s32.totalorder %s687_s16, %s683_s15  ;;  %p45_p4 = scmp.eq.s32.totalorder %s752_s19, 0 }
   0xc   : > { %s768_s24 = scalar_select %p29_p1, %s691_s17, %s31_s22  }
   0xd   : > { %p770_p5 = por %p39_p2, %p38_p0  ;;  %p774_p6 = por %p45_p4, %p44_p3 }
   0xe   : > { %p110_p7 = scmp.eq.s32.totalorder %s752_s19, 1  ;;  %p116_p8 = scmp.eq.s32.totalorder %s467_s20, 1 }
   0xf   : > { %p522_p10 = scmp.lt.s32.totalorder %s695_s18, 2  ;;  %s168_s29 = sand.u32 1, %s691_s17  }
  0x10   : > { %p781_p11 = por %p110_p7, %p38_p0  ;;  %p785_p12 = por %p116_p8, %p44_p3 }
  0x11   : > { %s482_s30 = sshll.u32 %s695_s18, 9  ;;  %s470_s5 = sshll.u32 %s168_s29, 5 }
  0x12   : > { %s931_s27 = scalar_select %p781_p11, 1, 0 }
  0x13   : > { %s932_s28 = scalar_select %p785_p12, 1, 0 }
  0x14   : > { %s794_s8 = scalar_lea.hbm %s923_s0, %s482_s30  ;;  %s172_s9 = scalar_lea.vmem [#allocation2], %s470_s5 }
  0x15   : > { %s179_s10 = sshll.u32 %s172_s9, 4  ;;  %p798_p13 = pnand %p522_p10, %p770_p5  ;;  %s802_s10 = int_to_ptr.vmem [resolvable:$true] %s179_s10 }
  0x16   : > { %s804_s12 = scalar_lea.sflag [#allocation3], %s168_s29  ;;  %s567_s13 = scalar_lea.hbm %s794_s8, 512 }
  0x17   : > { %p568_p0 = scmp.ne.s32.totalorder %s794_s8, %s567_s13  ;;  %p569_p1 = pneg %p798_p13 }
  0x18   : > { %s572_s22 = scalar_lea.hbm %s923_s0, 1024  ;;  %p573_p4 = scmp.lt.u32.totalorder %s794_s8, %s923_s0 }
  0x19   : > { %p570_p2 = pnand %p569_p1, %p568_p0  ;;  %p574_p5 = scmp.lt.u32.totalorder %s572_s22, %s567_s13 }
  0x1a   : > { %p576_p8 = scmp.lt.u32.totalorder %s567_s13, %s794_s8 }
  0x1b   : > { %p571_p3 = pneg %p570_p2  ;;  %p575_p7 = por %p574_p5, %p573_p4 }
  0x1d   : > { %p577_p10 = por %p576_p8, %p575_p7 }
  0x1f   : > { %p578_p9 = pnand %p577_p10, %p571_p3 }
  0x21   : > { %581 = shalt.err (!%p578_p9)
}
  0x22   : > { %s582_s29 = scalar_lea.vmem %s802_s10, 512  ;;  %s697_s30 = smov [#allocation2]  }
  0x23   : > { %p583_p0 = scmp.ne.s32.totalorder %s802_s10, %s582_s29  ;;  %s587_s5 = sshll.u32 %s697_s30, 4  ;;  %s588_s5 = int_to_ptr.vmem [resolvable:$false] %s587_s5 }
  0x24   : > { %s589_s6 = scalar_lea.vmem %s588_s5, 1024  ;;  %p590_p11 = scmp.lt.s32.totalorder %s802_s10, %s588_s5 }
  0x25   : > { %p585_p2 = pnand %p583_p0, %p569_p1  ;;  %p591_p4 = scmp.lt.s32.totalorder %s589_s6, %s582_s29 }
  0x27   : > { %p586_p12 = pneg %p585_p2  ;;  %p592_p5 = por %p591_p4, %p590_p11 }
  0x29   : > { %p593_p7 = pnand %p592_p5, %p586_p12 }
  0x2b   : > { %596 = shalt.err (!%p593_p7)
}
  0x2c   : > { %s698_s7 = smov 128   ;;  %s699_s9 = smov 8  }
  0x2d   : > { %514 = dma.hbm_to_vmem [thread:$0]  (!%p798_p13), %s794_s8, 512, %s802_s10, %s804_s12, %s698_s7, %s698_s7, %s699_s9  }
  0x2e   : > { %p473_p9 = scmp.ge.s32.totalorder %s695_s18, 1  ;;  %p187_p1 = scmp.lt.s32.totalorder %s695_s18, 3 }
  0x30   : > { %p188_p3 = pnand %p473_p9, %p187_p1 }
  0x31   : > { %s835_s13 = sand.u32 (!%p188_p3), 1, %s687_s16  }
  0x32   : > { %191 = sbr.rel (%p188_p3) target bundleno = 613 (0x265), region = 32  ;;  %s474_s14 = sshll.u32 (!%p188_p3), %s835_s13, 5 }
  0x33   : > { %s194_s20 = scalar_lea.sflag (!%p188_p3), [#allocation3], %s835_s13  ;;  %s197_s22 = scalar_lea.vmem (!%p188_p3), [#allocation2], %s474_s14 }
  0x39   : > { %670 = dma.done.wait (%p774_p6), %s194_s20, 512  }
  0x3a   : > { %672 = vsyncadd (%p774_p6), %s194_s20, 4294966784  ;;  %v700_v0 = vmov 0.0|0.0   ;;  %vm701_vm0 = vmmov 0   ;;  %v702_v1 = vmov 0.0   ;;  %v703_v2 = vmov 0   ;;  %v227_v3 = vld [vmem:[%s197_s22] sm:$0xff] }
  0x3b   : > { %499 = vmatprep.subr.bf16.mxu0 %v700_v0  ;;  %496 = vmatprep.mubr.msk.f32.mxu0 %vm701_vm0, %v702_v1  ;;  %v228_v4 = vld [vmem:[%s197_s22 + $0x8] sm:$0xff]  ;;  %v229_v5 = vld [vmem:[%s197_s22 + $0x10] sm:$0xff]  ;;  %v230_v7 = vld [vmem:[%s197_s22 + $0x18] sm:$0xff]  ;;  %vm237_vm1 = vcmask 261120   ;;  %s475_s12 = sshll.u32 %s835_s13, 3  ;;  %vm311_vm2 = vcmask 523264  }
  0x3c   : > { %562 = vset.pattern.permute.xlu0 %v703_v2  ;;  %v500_v6 = vpack.c.bf16 %v228_v4, %v227_v3  ;;  %v231_v8 = vld [vmem:[%s925_s2] sm:$0xff]  ;;  %v503_v9 = vpack.c.bf16 %v230_v7, %v229_v5  ;;  %s219_s23 = scalar_lea.vmem [#allocation5], %s475_s12  ;;  %s478_s25 = sshll.u32 %s752_s19, 7 }
  0x3d   : > { %234 = vperm.xlu0 %562, %v231_v8   ;;  %v226_v10 = vld [vmem:[%s924_s1] sm:$0xff]  ;;  %s854_s5 = scalar_lea.hbm %s926_s3, %s478_s25  ;;  %s356_s6 = sshll.u32 %s219_s23, 4  ;;  %s357_s6 = int_to_ptr.vmem [resolvable:$true] %s356_s6 }
  0x3e   : > { %501 = vmatpush3.bf16.msra.mxu0 %v500_v6  ;;  %s339_s7 = scalar_lea.sflag [#allocation4], %s835_s13  ;;  %s597_s9 = scalar_lea.vmem %s357_s6, 128 }
  0x3f   : > { %502 = vmatprep.subr.bf16.mxu0 %v700_v0  ;;  %p598_p6 = scmp.ne.s32.totalorder %s357_s6, %s597_s9  ;;  %p934_p11 = scmp.ne.s32.totalorder %s931_s27, 0 }
  0x40   : > { %s704_s14 = smov [#allocation5]  }
  0x41   : > { %p599_p12 = pnand %p598_p6, %p934_p11  ;;  %s601_s20 = sshll.u32 %s704_s14, 4  ;;  %s602_s20 = int_to_ptr.vmem [resolvable:$false] %s601_s20 }
  0x42   : > { %504 = vmatpush3.bf16.msra.mxu0 %v503_v9  ;;  %s603_s22 = scalar_lea.vmem %s602_s20, 256  ;;  %p604_p8 = scmp.lt.s32.totalorder %s357_s6, %s602_s20 }
  0x43   : > { %p600_p13 = pneg %p599_p12  ;;  %p605_p10 = scmp.lt.s32.totalorder %s603_s22, %s597_s9 }
  0x45   : > { %497 = vmatmul.mubr.msk.f32.vlgmr.msra.gmra.mrb[0].mxu0 %vm237_vm1, %v226_v10  ;;  %p606_p0 = por %p605_p10, %p604_p8 }
  0x47   : > { %p607_p2 = pnand %p606_p0, %p600_p13 }
  0xbc   : > { %v235_v11 = vpop.permute.xlu0 %234 }
 0x118   : > { %v307_v12 = vpop.f32.mrb[0].mxu0 }
 0x119   : > { %v308_v13 = vadd.f32 %v307_v12, %v235_v11  ;;  %v498_v14 = vpop.f32.mrb[1].mxu0 }
 0x11b   : > { %v313_v15 = vsel %vm311_vm2, %v308_v13, -inf  ;;  %312 = vst.msk [vmem:[%s219_s23] sm:$0xff] %vm311_vm2, %v308_v13 }
 0x11c   : > { %314 = vmax.xlane.f32.xlu0 %v313_v15 }
 0x1a9   : > { %v315_v16 = vpop.xlane.xlu0 %314 }
 0x1aa   : > { %v316_v17 = vsub.f32 %v308_v13, %v315_v16 }
 0x1ac   : > { %v317_v18 = vmul.f32 1.442695, %v316_v17 }
 0x1ae   : > { %563 = vpow2.f32 %v317_v18 }
 0x1b8   : > { %v564_v19 = vpop.eup %563 }
 0x1b9   : > { %v319_v20 = vsel %vm311_vm2, %v564_v19, 0.0  ;;  %v322_v21 = vmul.f32 %v564_v19, %v308_v13 }
 0x1ba   : > { %320 = vadd.xlane.f32.xlu1 %v319_v20 }
 0x1bb   : > { %v323_v22 = vsel %vm311_vm2, %v322_v21, 0.0 }
 0x1be   : > { %324 = vadd.xlane.f32.xlu1 %v323_v22 }
 0x1bf   : > { %610 = shalt.err (!%p607_p2)
}
 0x1c0   : > { %s611_s8 = scalar_lea.hbm %s854_s5, 128  ;;  %s615_s11 = scalar_lea.hbm %s926_s3, 256 }
 0x1c1   : > { %p612_p4 = scmp.ne.s32.totalorder %s854_s5, %s611_s8  ;;  %p616_p9 = scmp.lt.u32.totalorder %s854_s5, %s926_s3 }
 0x1c2   : > { %p617_p1 = scmp.lt.u32.totalorder %s615_s11, %s611_s8  ;;  %p619_p6 = scmp.lt.u32.totalorder %s611_s8, %s854_s5 }
 0x1c3   : > { %p613_p5 = pnand %p612_p4, %p934_p11 }
 0x1c4   : > { %p618_p3 = por %p617_p1, %p616_p9 }
 0x1c5   : > { %p614_p7 = pneg %p613_p5 }
 0x1c6   : > { %p620_p12 = por %p619_p6, %p618_p3 }
 0x1c8   : > { %p621_p13 = pnand %p620_p12, %p614_p7 }
 0x1ca   : > { %624 = shalt.err (!%p621_p13)
}
 0x1cb   : > { %507 = dma.vmem_to_hbm [thread:$0]  (%p934_p11), %s357_s6, 128, %s854_s5, %s339_s7   ;;  %v329_v24 = vlaneseq  ;;  %vm336_vm3 = vcmask 57344  }
 0x1cc   : > { %s479_s25 = sshll.u32 %s752_s19, 4  ;;  %s225_s29 = scalar_lea.vmem [#allocation6], %s835_s13 }
 0x1cd   : > { %v330_v25 = vand.u32 127, %v329_v24  ;;  %v332_v26 = vshrl.u32 %v329_v24, 7  ;;  %s369_s30 = sshll.u32 %s225_s29, 4  ;;  %s879_s5 = scalar_lea.hbm %s927_s4, %s479_s25  ;;  %s881_s30 = int_to_ptr.vmem [resolvable:$true] %s369_s30 }
 0x1ce   : > { %s344_s6 = scalar_lea.sflag [#allocation7], %s835_s13  ;;  %s625_s7 = scalar_lea.vmem %s881_s30, 16 }
 0x1cf   : > { %v333_v27 = vsub.s32 %v330_v25, %v332_v26  ;;  %p626_p8 = scmp.ne.s32.totalorder %s881_s30, %s625_s7  ;;  %s705_s19 = smov [#allocation6]  }
 0x1d0   : > { %s629_s20 = sshll.u32 %s705_s19, 4  ;;  %s630_s20 = int_to_ptr.vmem [resolvable:$false] %s629_s20 }
 0x1d1   : > { %p627_p10 = pnand %p626_p8, %p934_p11  ;;  %s631_s22 = scalar_lea.vmem %s630_s20, 32 }
 0x1d2   : > { %p632_p2 = scmp.lt.s32.totalorder %s881_s30, %s630_s20  ;;  %p633_p4 = scmp.lt.s32.totalorder %s631_s22, %s625_s7 }
 0x1d3   : > { %p628_p0 = pneg %p627_p10 }
 0x1d4   : > { %p634_p5 = por %p633_p4, %p632_p2 }
 0x1d6   : > { %p635_p7 = pnand %p634_p5, %p628_p0 }
 0x247   : > { %v321_v23 = vpop.xlane.xlu1 %320 }
 0x248   : > { %565 = vrcp.f32 %v321_v23 }
 0x24b   : > { %v325_v29 = vpop.xlane.xlu1 %324 }
 0x252   : > { %v566_v28 = vpop.eup %565 }
 0x253   : > { %v327_v30 = vmul.f32 %v566_v28, %v325_v29 }
 0x255   : > { %v334_v31 = vrot.slane %v327_v30, %v333_v27 }
 0x257   : > { %337 = vst.msk [vmem:[%s225_s29] sm:$0x1] %vm336_vm3, %v334_v31 }
 0x258   : > { %638 = shalt.err (!%p635_p7)
}
 0x259   : > { %s639_s13 = scalar_lea.hbm %s879_s5, 16  ;;  %s643_s26 = scalar_lea.hbm %s927_s4, 32 }
 0x25a   : > { %p640_p9 = scmp.ne.s32.totalorder %s879_s5, %s639_s13  ;;  %p644_p6 = scmp.lt.u32.totalorder %s879_s5, %s927_s4 }
 0x25b   : > { %p645_p12 = scmp.lt.u32.totalorder %s643_s26, %s639_s13  ;;  %p647_p8 = scmp.lt.u32.totalorder %s639_s13, %s879_s5 }
 0x25c   : > { %p641_p1 = pnand %p640_p9, %p934_p11 }
 0x25d   : > { %p646_p13 = por %p645_p12, %p644_p6 }
 0x25e   : > { %p642_p3 = pneg %p641_p1 }
 0x25f   : > { %p648_p10 = por %p647_p8, %p646_p13 }
 0x261   : > { %p649_p0 = pnand %p648_p10, %p642_p3 }
 0x263   : > { %652 = shalt.err (!%p649_p0)
}
 0x264   : > { %508 = dma.vmem_to_hbm [thread:$0]  (%p934_p11), %s881_s30, 16, %s879_s5, %s344_s6  }
 0x265 PF: > { %s381_s23 = sand.u32 1, %s683_s15   ;;  %p935_p2 = scmp.ne.s32.totalorder %s932_s28, 0 }
 0x266   : > { %p936_p4 = scmp.ge.s32.totalorder %s695_s18, 2  ;;  %s382_s25 = scalar_lea.sflag [#allocation4], %s381_s23 }
 0x268   : > { %p516_p5 = pnand %p936_p4, %p935_p2 }
 0x26a   : > { %674 = dma.done.wait (!%p516_p5), %s382_s25, 128  }
 0x26b   : > { %676 = vsyncadd (!%p516_p5), %s382_s25, 4294967168  ;;  %s391_s29 = scalar_lea.sflag [#allocation7], %s381_s23 }
 0x26c   : > { %678 = dma.done.wait (!%p516_p5), %s391_s29, 16  }
 0x26d   : > { %680 = vsyncadd (!%p516_p5), %s391_s29, 4294967280  ;;  %p21_p11 = scmp.ge.s32.totalorder %s756_s21, 4   ;;  %s937_s15 = smov %s687_s16 }
 0x26e   : > { %s938_s16 = smov %s691_s17  ;;  %s939_s17 = smov %s768_s24 }
 0x26f   : > { %s940_s18 = smov %s756_s21  ;;  %23 = sbr.rel (!%p21_p11) target bundleno = 7 (0x7), region = 94 }
 0x276   :  { %395 = vsyncpa [#allocation3], 1 }
 0x277   :  { %397 = vsyncpa [#allocation3 + $0x1], 1 }
 0x278   :  { %398 = vsyncpa [#allocation4], 1 }
 0x279   :  { %400 = vsyncpa [#allocation4 + $0x1], 1 }
 0x27a   :  { %401 = vsyncpa [#allocation7], 1 }
 0x27b   :  { %403 = vsyncpa [#allocation7 + $0x1], 1 }

</bundles_post_ra>
